<compile_context>
chip_gen: v7x
topology: tpu7x:2x2x1
jax: 0.10.0
libtpu: 0.0.40
codegen_flags: <defaults>
</compile_context>

<pallas_src>
import functools

import jax
import jax.numpy as jnp
from jax.experimental import pallas as pl
from jax.experimental.pallas import tpu as pltpu


# ----------------------------------------------------------------------------
# Kernels
# ----------------------------------------------------------------------------
def _conv1x1_kernel(x_ref, w_ref, b_ref, o_ref, *, slope, mm_dtype):
    """1x1 conv (matmul over channels); BN scale pre-folded into w; +bias +LeakyReLU."""
    y = jnp.dot(x_ref[...].astype(mm_dtype), w_ref[...],
                preferred_element_type=jnp.float32)
    y = y + b_ref[...]
    o_ref[...] = jnp.where(y >= 0.0, y, slope * y)


def _fused_level_kernel(x_ref, xt_ref, xb_ref, u_ref, ut_ref, ub_ref,
                        w1_ref, b1_ref, w3_ref, b3_ref, o_ref, pad_ref,
                        *, TH, W, C, kh, kw, slope, mm_dtype):
    """One FPN level, one (batch, row-strip) grid step:
         lat = LeakyReLU(1x1conv(x) + b1)                 (BN folded into w1)
         z   = lat + nearest_upsample(u, (kh, kw))        (factored add)
         out = LeakyReLU(3x3conv_pad1(z) + b3)            (BN folded into w3)
       The 3x3 conv is 9 shifted accumulating matmuls over a (TH+2, W+2, C)
       zero-padded VMEM scratch (no im2col materialization).
    """
    s = pl.program_id(1)
    S = pl.num_programs(1)
    Cin = x_ref.shape[3]
    w2 = W // kw
    thu = TH // kh

    w1 = w1_ref[...]                      # (Cin, C), mm_dtype
    b1 = b1_ref[...]                      # (1, C), f32

    def lat_act(xrows):                   # (R, W, Cin) f32 -> (R*W, C) f32
        r = xrows.shape[0]
        y = jnp.dot(xrows.reshape(r * W, Cin).astype(mm_dtype), w1,
                    preferred_element_type=jnp.float32)
        y = y + b1
        return jnp.where(y >= 0.0, y, slope * y)

    # ---- main strip rows: lateral conv + factored upsample-add into pad ----
    lat = lat_act(x_ref[0])                                   # (TH*W, C)
    u = u_ref[0]                                              # (thu, w2, C)
    z = (lat.reshape(thu, kh, w2, kw, C) + u[:, None, :, None, :]
         ).reshape(TH, W, C)
    pad_ref[1:TH + 1, 1:W + 1, :] = z.astype(mm_dtype)

    # ---- halo rows: recomputed from 1-row neighbour blocks, gated to zero
    # ---- at the image borders (s == 0 / s == S-1).
    gate_t = jnp.where(s == 0, 0.0, 1.0)
    gate_b = jnp.where(s == S - 1, 0.0, 1.0)

    lat_t = lat_act(xt_ref[0])                                # (W, C)
    z_t = (lat_t.reshape(w2, kw, C) + ut_ref[0, 0][:, None, :]).reshape(W, C)
    pad_ref[0:1, 1:W + 1, :] = (gate_t * z_t).reshape(1, W, C).astype(mm_dtype)

    lat_b = lat_act(xb_ref[0])                                # (W, C)
    z_b = (lat_b.reshape(w2, kw, C) + ub_ref[0, 0][:, None, :]).reshape(W, C)
    pad_ref[TH + 1:TH + 2, 1:W + 1, :] = (
        gate_b * z_b).reshape(1, W, C).astype(mm_dtype)

    # Left/right 1-px zero border columns.  Re-written every step (cheap:
    # 2*(TH+2)*C elements) so correctness does not depend on a "first grid
    # step" init — the parallel grid axes may be sharded across TensorCores,
    # each with its own scratch instance.
    zcol = jnp.zeros((TH + 2, 1, C), mm_dtype)
    pad_ref[:, 0:1, :] = zcol
    pad_ref[:, W + 1:W + 2, :] = zcol

    # ---- 3x3 conv: 9 shifted accumulating matmuls (K = C per tap) ----------
    acc = jnp.zeros((TH * W, C), jnp.float32)
    for dh in range(3):
        for dw in range(3):
            patch = pad_ref[dh:dh + TH, dw:dw + W, :].reshape(TH * W, C)
            acc = acc + jnp.dot(patch, w3_ref[3 * dh + dw],
                                preferred_element_type=jnp.float32)
    y = acc + b3_ref[...]
    y = jnp.where(y >= 0.0, y, slope * y)
    o_ref[...] = y.reshape(1, TH, W, C)


# ----------------------------------------------------------------------------
# Helpers
# ----------------------------------------------------------------------------
def _vmem_limit(est_bytes):
    return int(min(max(2 * est_bytes, 32 * 1024 * 1024), 100 * 1024 * 1024))


def _pick_strip_rows(H, W, C, Cin, kh, mm_bytes, budget_bytes=8 << 20):
    """Largest row-strip height TH that divides H, is a multiple of kh, fits a
    per-strip VMEM budget, and (when possible) yields >= 2 strips so the
    pipeline has overlap and v7x's two TensorCores both get work."""
    row_bytes = W * (Cin * 4 + 2 * C * 4 + C * mm_bytes)
    cap = max(kh, budget_bytes // max(row_bytes, 1))
    if H >= 2 * kh:
        cap = min(cap, H // 2)
    cands = [d for d in range(kh, H + 1, kh) if H % d == 0]
    fits = [d for d in cands if d <= cap]
    return max(fits) if fits else min(cands)


def upsample_nearest(x_nhwc, H, W):
    """F.interpolate(mode='nearest'): src = floor(dst * in / out).
    Glue / fallback only (non-integer factors); the fused kernel upsamples
    in-VMEM for the standard 2x pyramid."""
    _, h, w, _ = x_nhwc.shape
    ri = (jnp.arange(H) * h) // H
    ci = (jnp.arange(W) * w) // W
    return x_nhwc[:, ri][:, :, ci]


# ----------------------------------------------------------------------------
# Pallas wrappers
# ----------------------------------------------------------------------------
def conv1x1_bn_act(x_nhwc, w_io, scale, bias, slope, *, mm_dtype=jnp.float32):
    """Standalone 1x1 conv + folded BN + LeakyReLU (top pyramid level)."""
    N, H, W, Cin = x_nhwc.shape
    Cout = w_io.shape[1]
    rows = N * H * W
    wf = (w_io * scale[None, :]).astype(mm_dtype)

    TM = 1024
    if rows < TM:
        TM = max(8, ((rows + 7) // 8) * 8)
    rows_p = pl.cdiv(rows, TM) * TM

    x2 = x_nhwc.reshape(rows, Cin)
    if rows_p != rows:
        x2 = jnp.pad(x2, ((0, rows_p - rows), (0, 0)))

    mm_bytes = jnp.dtype(mm_dtype).itemsize
    est = 2 * (TM * Cin * 4 + TM * Cout * 4) + Cin * Cout * mm_bytes + Cout * 4

    out = pl.pallas_call(
        functools.partial(_conv1x1_kernel, slope=slope, mm_dtype=mm_dtype),
        out_shape=jax.ShapeDtypeStruct((rows_p, Cout), jnp.float32),
        grid=(rows_p // TM,),
        in_specs=[
            pl.BlockSpec((TM, Cin), lambda i: (i, 0)),
            pl.BlockSpec((Cin, Cout), lambda i: (0, 0)),
            pl.BlockSpec((1, Cout), lambda i: (0, 0)),
        ],
        out_specs=pl.BlockSpec((TM, Cout), lambda i: (i, 0)),
        compiler_params=pltpu.CompilerParams(
            dimension_semantics=("parallel",),
            vmem_limit_bytes=_vmem_limit(est)),
    )(x2, wf, bias.reshape(1, -1))
    return out[:rows].reshape(N, H, W, Cout)


def fused_level(x_nhwc, top_nhwc, lat_params, merge_params, slope,
                *, mm_dtype=jnp.float32, strip_rows=None):
    """One FPN level (1x1 lateral + upsample-add + 3x3 merge, folded BN +
    LeakyReLU) as a single pallas_call tiled over (batch, H row-strips)."""
    N, H, W, Cin = x_nhwc.shape
    w1, s1, b1 = lat_params            # (Cin, C), (C,), (C,)
    w3, s3, b3 = merge_params          # (3, 3, C, C) HWIO, (C,), (C,)
    C = w1.shape[1]
    mm_bytes = jnp.dtype(mm_dtype).itemsize

    # fold BN scale into the conv weights; kernels only add the bias
    w1f = (w1 * s1[None, :]).astype(mm_dtype)
    w3f = (w3 * s3[None, None, None, :]).reshape(9, C, C).astype(mm_dtype)

    # top-down path: in-kernel nearest upsample needs an integer factor
    # (always true for FPN 2x pyramids); otherwise pre-upsample here.
    h2, w2 = top_nhwc.shape[1], top_nhwc.shape[2]
    if H % h2 == 0 and W % w2 == 0:
        kh, kw = H // h2, W // w2
        u = top_nhwc
    else:
        kh, kw = 1, 1
        u = upsample_nearest(top_nhwc, H, W)
        h2, w2 = H, W

    TH = strip_rows if strip_rows is not None else _pick_strip_rows(
        H, W, C, Cin, kh, mm_bytes)
    assert H % TH == 0 and TH % kh == 0
    S = H // TH
    thu = TH // kh

    # explicit VMEM budget: double-buffered blocks + padded scratch
    blk_in = ((TH + 2) * W * Cin * 4 + (thu + 2) * w2 * C * 4
              + (Cin * C + 9 * C * C) * mm_bytes + 2 * C * 4)
    blk_out = TH * W * C * 4
    pad_bytes = (TH + 2) * (W + 2) * C * mm_bytes
    est = 2 * (blk_in + blk_out) + pad_bytes

    out = pl.pallas_call(
        functools.partial(_fused_level_kernel, TH=TH, W=W, C=C,
                          kh=kh, kw=kw, slope=slope, mm_dtype=mm_dtype),
        out_shape=jax.ShapeDtypeStruct((N, H, W, C), jnp.float32),
        grid=(N, S),
        in_specs=[
            # main strip of x, plus 1-row top/bottom halo rows (clamped)
            pl.BlockSpec((1, TH, W, Cin), lambda n, s: (n, s, 0, 0)),
            pl.BlockSpec((1, 1, W, Cin),
                         lambda n, s: (n, jnp.maximum(s * TH - 1, 0), 0, 0)),
            pl.BlockSpec((1, 1, W, Cin),
                         lambda n, s: (n, jnp.minimum((s + 1) * TH, H - 1), 0, 0)),
            # matching top-down rows (coarse grid), plus halo rows (clamped)
            pl.BlockSpec((1, thu, w2, C), lambda n, s: (n, s, 0, 0)),
            pl.BlockSpec((1, 1, w2, C),
                         lambda n, s: (n, jnp.maximum((s * TH - 1) // kh, 0), 0, 0)),
            pl.BlockSpec((1, 1, w2, C),
                         lambda n, s: (n, jnp.minimum(((s + 1) * TH) // kh, h2 - 1), 0, 0)),
            # weights / biases (BN folded into weights)
            pl.BlockSpec((Cin, C), lambda n, s: (0, 0)),
            pl.BlockSpec((1, C), lambda n, s: (0, 0)),
            pl.BlockSpec((9, C, C), lambda n, s: (0, 0, 0)),
            pl.BlockSpec((1, C), lambda n, s: (0, 0)),
        ],
        out_specs=pl.BlockSpec((1, TH, W, C), lambda n, s: (n, s, 0, 0)),
        scratch_shapes=[
            pltpu.VMEM((TH + 2, W + 2, C), mm_dtype),   # zero-padded strip sum
        ],
        compiler_params=pltpu.CompilerParams(
            dimension_semantics=("parallel", "parallel"),
            vmem_limit_bytes=_vmem_limit(est)),
    )(x_nhwc, x_nhwc, x_nhwc, u, u, u,
      w1f, b1.reshape(1, -1), w3f, b3.reshape(1, -1))
    return out


# ----------------------------------------------------------------------------
# Parameter construction (deterministic, synthetic)
# ----------------------------------------------------------------------------
def _fold_bn(gamma, beta, mean, var, eps=1e-5):
    scale = gamma / jnp.sqrt(var + eps)
    bias = beta - mean * scale
    return scale, bias


def make_fpn_params(key, inps, oup):
    leaky = 0.1 if oup <= 64 else 0.0
    params = {"leaky": leaky}

    def bn_params(k, c):
        k1, k2, k3, k4 = jax.random.split(k, 4)
        gamma = 1.0 + 0.1 * jax.random.normal(k1, (c,), jnp.float32)
        beta = 0.1 * jax.random.normal(k2, (c,), jnp.float32)
        mean = 0.1 * jax.random.normal(k3, (c,), jnp.float32)
        var = jnp.abs(jax.random.normal(k4, (c,), jnp.float32)) + 0.5
        return _fold_bn(gamma, beta, mean, var)

    keys = jax.random.split(key, 10)
    for name, cin, kw_, kb in (("out1", inps[0], keys[0], keys[1]),
                               ("out2", inps[1], keys[2], keys[3]),
                               ("out3", inps[2], keys[4], keys[5])):
        w = jax.random.normal(kw_, (cin, oup), jnp.float32) * (1.0 / jnp.sqrt(cin))
        s, b = bn_params(kb, oup)
        params[name] = (w, s, b)
    for name, kw_, kb in (("merge1", keys[6], keys[7]),
                          ("merge2", keys[8], keys[9])):
        w = jax.random.normal(kw_, (3, 3, oup, oup), jnp.float32) * (1.0 / jnp.sqrt(9 * oup))
        s, b = bn_params(kb, oup)
        params[name] = (w, s, b)
    return params


# ----------------------------------------------------------------------------
# FPN forward (mirrors the PyTorch module) — 3 pallas_calls total
# ----------------------------------------------------------------------------
def fpn_forward(features, params, *, mm_dtype=jnp.float32):
    feats = list(features.values())                           # NCHW
    feats = [jnp.transpose(f, (0, 2, 3, 1)) for f in feats]   # -> NHWC
    slope = params["leaky"]

    out3 = conv1x1_bn_act(feats[2], *params["out3"], slope, mm_dtype=mm_dtype)
    out2 = fused_level(feats[1], out3, params["out2"], params["merge2"], slope,
                       mm_dtype=mm_dtype)
    out1 = fused_level(feats[0], out2, params["out1"], params["merge1"], slope,
                       mm_dtype=mm_dtype)

    return [jnp.transpose(o, (0, 3, 1, 2)) for o in (out1, out2, out3)]


# ----------------------------------------------------------------------------
# Pure-JAX reference (for correctness check)
# ----------------------------------------------------------------------------
def _ref_forward(features, params):
    feats = [jnp.transpose(f, (0, 2, 3, 1)) for f in features.values()]
    slope = params["leaky"]

    def lrelu(x):
        return jnp.where(x >= 0, x, slope * x)

    def p1x1(x, w, s, b):
        y = jnp.einsum("nhwc,co->nhwo", x, w) * s + b
        return lrelu(y)

    def p3x3(x, w, s, b):
        y = jax.lax.conv_general_dilated(
            x, w, (1, 1), "SAME",
            dimension_numbers=("NHWC", "HWIO", "NHWC"))
        return lrelu(y * s + b)

    o1 = p1x1(feats[0], *params["out1"])
    o2 = p1x1(feats[1], *params["out2"])
    o3 = p1x1(feats[2], *params["out3"])
    o2 = p3x3(o2 + upsample_nearest(o3, o2.shape[1], o2.shape[2]), *params["merge2"])
    o1 = p3x3(o1 + upsample_nearest(o2, o1.shape[1], o1.shape[2]), *params["merge1"])
    return [jnp.transpose(o, (0, 3, 1, 2)) for o in (o1, o2, o3)]


# ----------------------------------------------------------------------------
if __name__ == "__main__":
    key = jax.random.PRNGKey(0)
    k_feat, k_par = jax.random.split(key)

    N = 2
    inps = [8, 16, 32]
    oup = 32
    kf1, kf2, kf3 = jax.random.split(k_feat, 3)
    features = {
        "f1": jax.random.normal(kf1, (N, inps[0], 16, 16), jnp.float32),
        "f2": jax.random.normal(kf2, (N, inps[1], 8, 8), jnp.float32),
        "f3": jax.random.normal(kf3, (N, inps[2], 4, 4), jnp.float32),
    }
    params = make_fpn_params(k_par, inps, oup)
    refs = _ref_forward(features, params)

    # strict correctness check with f32 matmuls (strip tiling exercises the
    # 1-row halo path: level1 uses 2 strips of 8 rows, level2 2 strips of 4)
    outs = fpn_forward(features, params, mm_dtype=jnp.float32)
    outs = [jax.block_until_ready(o) for o in outs]
    for o, r in zip(outs, refs):
        assert o.shape == r.shape
        assert jnp.max(jnp.abs(o - r)) < 1e-3, "f32 mismatch vs reference"

    # production setting (v5e/v6e/v7x): bf16 matmul operands, f32 accumulation
    # and elementwise math — loose sanity tolerance for the low-precision path
    outs_bf16 = fpn_forward(features, params, mm_dtype=jnp.bfloat16)
    outs_bf16 = [jax.block_until_ready(o) for o in outs_bf16]
    for o, r in zip(outs_bf16, refs):
        assert o.shape == r.shape
        assert jnp.max(jnp.abs(o - r)) < 1.5e-1, "bf16 mismatch vs reference"

    print("KERNEL_OK")
</pallas_src>

<mosaic_0001>
module attributes {stable_mosaic.version = 11 : i64} {
  func.func @_conv1x1_kernel(%arg0: i32, %arg1: memref<32x32xf32, #tpu.memory_space<vmem>>, %arg2: memref<32x32xf32, #tpu.memory_space<vmem>>, %arg3: memref<1x32xf32, #tpu.memory_space<vmem>>, %arg4: memref<32x32xf32, #tpu.memory_space<vmem>>) attributes {dimension_semantics = [#tpu.dimension_semantics<parallel>], iteration_bounds = array<i64: 1>, scalar_prefetch = 0 : i64, scratch_operands = 0 : i64, tpu.core_type = #tpu.core_type<tc>, window_params = [{transform_indices = @transform_0, window_bounds = array<i64: 32, 32>}, {pipeline_mode = #tpu.pipeline_mode<synchronous>, transform_indices = @transform_1, window_bounds = array<i64: 32, 32>}, {pipeline_mode = #tpu.pipeline_mode<synchronous>, transform_indices = @transform_2, window_bounds = array<i64: 1, 32>}, {transform_indices = @transform_3, window_bounds = array<i64: 32, 32>}]} {
    %c0 = arith.constant 0 : index
    %c0_0 = arith.constant 0 : index
    %0 = vector.load %arg1[%c0, %c0_0] : memref<32x32xf32, #tpu.memory_space<vmem>>, vector<32x32xf32>
    %c0_1 = arith.constant 0 : index
    %c0_2 = arith.constant 0 : index
    %1 = vector.load %arg2[%c0_1, %c0_2] : memref<32x32xf32, #tpu.memory_space<vmem>>, vector<32x32xf32>
    %cst = arith.constant dense<0.000000e+00> : vector<32x32xf32>
    %2 = tpu.matmul %0, %1, %cst {dimension_numbers = #tpu.dot_dimension_numbers<[1], [0], [0], [1], [0, 0, 1, 1], [], []>} : vector<32x32xf32>, vector<32x32xf32>, vector<32x32xf32> -> vector<32x32xf32>
    %c0_3 = arith.constant 0 : index
    %c0_4 = arith.constant 0 : index
    %3 = vector.load %arg3[%c0_3, %c0_4] : memref<1x32xf32, #tpu.memory_space<vmem>>, vector<1x32xf32>
    %4 = vector.broadcast %3 : vector<1x32xf32> to vector<32x32xf32>
    %5 = arith.addf %2, %4 : vector<32x32xf32>
    %cst_5 = arith.constant 0.000000e+00 : f32
    %6 = vector.broadcast %cst_5 : f32 to vector<32x32xf32>
    %7 = arith.cmpf oge, %5, %6 : vector<32x32xf32>
    %cst_6 = arith.constant 1.000000e-01 : f32
    %8 = vector.broadcast %cst_6 : f32 to vector<32x32xf32>
    %9 = arith.mulf %8, %5 : vector<32x32xf32>
    %10 = arith.select %7, %5, %9 : vector<32x32xi1>, vector<32x32xf32>
    %c0_7 = arith.constant 0 : index
    %c0_8 = arith.constant 0 : index
    %11 = vector.load %arg4[%c0_7, %c0_8] : memref<32x32xf32, #tpu.memory_space<vmem>>, vector<32x32xf32>
    tpu.vector_store %arg4[%c0_7, %c0_8], %10 {strides = array<i32>} : memref<32x32xf32, #tpu.memory_space<vmem>>, vector<32x32xf32>,
    return
  }
  func.func @transform_0(%arg0: i32) -> (i32, i32) {
    %c0_i32 = arith.constant 0 : i32
    %c0_i32_0 = arith.constant 0 : i32
    return %arg0, %c0_i32 : i32, i32
  }
  func.func @transform_1(%arg0: i32) -> (i32, i32) {
    %c0_i32 = arith.constant 0 : i32
    %c0_i32_0 = arith.constant 0 : i32
    %c0_i32_1 = arith.constant 0 : i32
    return %c0_i32, %c0_i32_0 : i32, i32
  }
  func.func @transform_2(%arg0: i32) -> (i32, i32) {
    %c0_i32 = arith.constant 0 : i32
    %c0_i32_0 = arith.constant 0 : i32
    %c0_i32_1 = arith.constant 0 : i32
    return %c0_i32, %c0_i32_0 : i32, i32
  }
  func.func @transform_3(%arg0: i32) -> (i32, i32) {
    %c0_i32 = arith.constant 0 : i32
    %c0_i32_0 = arith.constant 0 : i32
    return %arg0, %c0_i32 : i32, i32
  }
}

</mosaic_0001>

<bundles_post_ra>
// kernel: tpu_custom_call.1
= control target key start
LH: loop header
LB: loop body
LE: loop exit
PB: predicated region body
PF: predicated region fallthrough
CT: control target
= control target key end

     0   :  { %8 = vsyncpa [#allocation3], 0  ;;  %s387_s0 = inlined_call_operand.hbm [shape: f32[32,32], index: 0, kind: input, shape index: {}]   ;;  %s388_s1 = inlined_call_operand.hbm [shape: f32[32,32], index: 1, kind: input, shape index: {}]   ;;  %s389_s2 = inlined_call_operand.vmem [shape: f32[1,32], index: 2, kind: input, shape index: {}]   ;;  %s390_s3 = inlined_call_operand.hbm [shape: f32[32,32], index: 3, kind: output, shape index: {}]  }
   0x1   :  { %9 = vsyncpa [#allocation6], 0 }
   0x2   :  { %10 = vsyncpa [#allocation4], 0  ;;  %s306_s12 = smov [#allocation2]   ;;  %s234_s16 = scalar_lea.hbm %s387_s0, 512 }
   0x3   :  { %s16_s13 = sshll.u32 %s306_s12, 4  ;;  %p235_p0 = scmp.ne.s32.totalorder %s387_s0, %s234_s16  ;;  %s17_s13 = int_to_ptr.vmem [resolvable:$true] %s16_s13 }
   0x4   :  { %p238_p1 = scmp.lt.u32.totalorder %s234_s16, %s387_s0 }
   0x6   :  { %p240_p2 = pnand %p238_p1, %p235_p0 }
   0x8   :  { %243 = shalt.err (!%p240_p2)
}
   0x9   :  { %s244_s21 = scalar_lea.vmem %s17_s13, 512  ;;  %p249_p4 = scmp.lt.s32.totalorder %s17_s13, %s17_s13 }
   0xa   :  { %p245_p3 = scmp.ne.s32.totalorder %s17_s13, %s244_s21  ;;  %p250_p5 = scmp.lt.s32.totalorder %s244_s21, %s244_s21 }
   0xc   :  { %p251_p6 = por %p250_p5, %p249_p4 }
   0xe   :  { %p252_p7 = pnand %p251_p6, %p245_p3 }
  0x10   :  { %255 = shalt.err (!%p252_p7)
}
  0x11   :  { %s307_s22 = smov 128   ;;  %s308_s23 = smov 8  }
  0x12   :  { %22 = dma.hbm_to_vmem [thread:$0]  %s387_s0, 512, %s17_s13, [#allocation3], %s307_s22, %s307_s22, %s308_s23  }
  0x13   :  { %s309_s26 = smov [#allocation5]   ;;  %s256_s30 = scalar_lea.hbm %s388_s1, 512 }
  0x14   :  { %s28_s27 = sshll.u32 %s309_s26, 4  ;;  %p257_p8 = scmp.ne.s32.totalorder %s388_s1, %s256_s30  ;;  %s29_s27 = int_to_ptr.vmem [resolvable:$true] %s28_s27 }
  0x15   :  { %p260_p9 = scmp.lt.u32.totalorder %s256_s30, %s388_s1 }
  0x17   :  { %p262_p10 = pnand %p260_p9, %p257_p8 }
  0x19   :  { %265 = shalt.err (!%p262_p10)
}
  0x1a   :  { %s266_s8 = scalar_lea.vmem %s29_s27, 512  ;;  %p271_p12 = scmp.lt.s32.totalorder %s29_s27, %s29_s27 }
  0x1b   :  { %p267_p11 = scmp.ne.s32.totalorder %s29_s27, %s266_s8  ;;  %p272_p13 = scmp.lt.s32.totalorder %s266_s8, %s266_s8 }
  0x1d   :  { %p273_p0 = por %p272_p13, %p271_p12 }
  0x1f   :  { %p274_p1 = pnand %p273_p0, %p267_p11 }
  0x21   :  { %277 = shalt.err (!%p274_p1)
}
  0x22   :  { %34 = dma.hbm_to_vmem [thread:$0]  %s388_s1, 512, %s29_s27, [#allocation6], %s307_s22, %s307_s22, %s308_s23  }
  0x23   :  { %300 = dma.done.wait [#allocation3], 512  }
  0x24   :  { %301 = vsyncadd [#allocation3], 4294966784 }
  0x25   :  { %302 = dma.done.wait [#allocation6], 512  }
  0x26   :  { %303 = vsyncadd [#allocation6], 4294966784  ;;  %vm58_vm0 = vcmask 261120   ;;  %v47_v0 = vld [vmem:[#allocation5] sm:$0xff]  ;;  %v48_v1 = vld [vmem:[#allocation5 + $0x8] sm:$0xff]  ;;  %s310_s11 = smov [#allocation7]  }
  0x27   :  { %v49_v2 = vld [vmem:[#allocation5 + $0x10] sm:$0xff]  ;;  %v217_v3 = vpack.c.bf16 %v48_v1, %v47_v0  ;;  %v50_v4 = vld [vmem:[#allocation5 + $0x18] sm:$0xff]  ;;  %v43_v5 = vld [vmem:[#allocation2] sm:$0xff]  ;;  %s177_s12 = sshll.u32 %s310_s11, 4  ;;  %s178_s12 = int_to_ptr.vmem [resolvable:$true] %s177_s12 }
  0x28   :  { %v45_v6 = vld [vmem:[#allocation2 + $0x10] sm:$0xff]  ;;  %v221_v7 = vpack.c.bf16 %v50_v4, %v49_v2  ;;  %211 = vmatprep.mubr.msk.f32.mxu0 %vm58_vm0, %v43_v5  ;;  %v44_v8 = vld [vmem:[#allocation2 + $0x8] sm:$0xff]  ;;  %v46_v9 = vld [vmem:[#allocation2 + $0x18] sm:$0xff]  ;;  %p283_p3 = scmp.lt.s32.totalorder %s178_s12, %s178_s12 }
  0x29   :  { %214 = vmatprep.mubr.msk.f32.mxu1 %vm58_vm0, %v45_v6  ;;  %218 = vmatprep.subr.bf16.mxu0 %v217_v3  ;;  %v190_v10 = vld [vmem:[%s389_s2] ss:$0 sm:$0xff]  ;;  %s278_s2 = scalar_lea.vmem %s178_s12, 512 }
  0x2a   :  { %225 = vmatprep.subr.bf16.mxu1 %v217_v3  ;;  %220 = vmatpush3.bf16.msra.mxu0 %v217_v3  ;;  %p279_p2 = scmp.ne.s32.totalorder %s178_s12, %s278_s2  ;;  %p284_p4 = scmp.lt.s32.totalorder %s278_s2, %s278_s2 }
  0x2b   :  { %227 = vmatpush3.bf16.msra.mxu1 %v217_v3  ;;  %222 = vmatprep.subr.bf16.mxu0 %v221_v7 }
  0x2c   :  { %226 = vmatprep.subr.bf16.mxu1 %v221_v7  ;;  %p285_p5 = por %p284_p4, %p283_p3 }
  0x2e   :  { %224 = vmatpush3.bf16.msra.mxu0 %v221_v7  ;;  %p286_p6 = pnand %p285_p5, %p279_p2 }
  0x2f   :  { %228 = vmatpush3.bf16.msra.mxu1 %v221_v7 }
  0x31   :  { %212 = vmatmul.mubr.msk.f32.vlgmr.msra.gmra.mrb[0].mxu0 %vm58_vm0, %v44_v8 }
  0x32   :  { %215 = vmatmul.mubr.msk.f32.vlgmr.msra.gmra.mrb[0].mxu1 %vm58_vm0, %v46_v9 }
 0x104   :  { %v213_v11 = vpop.f32.mrb[0].mxu0 }
 0x105   :  { %v216_v12 = vpop.f32.mrb[0].mxu1  ;;  %v143_v13 = vadd.f32 %v213_v11, %v190_v10  ;;  %v137_v15 = vpop.f32.mrb[1].mxu0 }
 0x106   :  { %v153_v14 = vadd.f32 %v216_v12, %v190_v10  ;;  %v147_v16 = vpop.f32.mrb[1].mxu1  ;;  %v138_v17 = vadd.f32 %v190_v10, %v137_v15 }
 0x107   :  { %v148_v18 = vadd.f32 %v190_v10, %v147_v16  ;;  %vm157_vm1 = vcmp.ge.f32.partialorder %v143_v13, 0.0  ;;  %v161_v19 = vmul.f32 0.1, %v143_v13 }
 0x108   :  { %vm159_vm2 = vcmp.ge.f32.partialorder %v153_v14, 0.0  ;;  %v163_v20 = vmul.f32 0.1, %v153_v14  ;;  %vm156_vm3 = vcmp.ge.f32.partialorder %v138_v17, 0.0  ;;  %v160_v21 = vmul.f32 0.1, %v138_v17 }
 0x109   :  { %vm158_vm4 = vcmp.ge.f32.partialorder %v148_v18, 0.0  ;;  %v162_v22 = vmul.f32 0.1, %v148_v18  ;;  %v165_v23 = vsel %vm157_vm1, %v143_v13, %v161_v19 }
 0x10a   :  { %v167_v24 = vsel %vm159_vm2, %v153_v14, %v163_v20  ;;  %169 = vst.msk [vmem:[#allocation7 + $0x8] sm:$0xff] %vm58_vm0, %v165_v23  ;;  %v164_v25 = vsel %vm156_vm3, %v138_v17, %v160_v21 }
 0x10b   :  { %171 = vst.msk [vmem:[#allocation7 + $0x18] sm:$0xff] %vm58_vm0, %v167_v24  ;;  %v166_v26 = vsel %vm158_vm4, %v148_v18, %v162_v22  ;;  %168 = vst.msk [vmem:[#allocation7] sm:$0xff] %vm58_vm0, %v164_v25 }
 0x10c   :  { %170 = vst.msk [vmem:[#allocation7 + $0x10] sm:$0xff] %vm58_vm0, %v166_v26 }
 0x10d   :  { %289 = shalt.err (!%p286_p6)
}
 0x10e   :  { %s290_s15 = scalar_lea.hbm %s390_s3, 512 }
 0x10f   :  { %p291_p7 = scmp.ne.s32.totalorder %s390_s3, %s290_s15  ;;  %p294_p8 = scmp.lt.u32.totalorder %s290_s15, %s390_s3 }
 0x111   :  { %p296_p9 = pnand %p294_p8, %p291_p7 }
 0x113   :  { %299 = shalt.err (!%p296_p9)
}
 0x114   :  { %183 = dma.vmem_to_hbm [thread:$0]  %s178_s12, 512, %s390_s3, [#allocation4], %s307_s22, %s307_s22, %s308_s23  }
 0x115   :  { %304 = dma.done.wait [#allocation4], 512  }
 0x116   :  { %305 = vsyncadd [#allocation4], 4294966784 }
 0x117   :  { %187 = vsyncpa [#allocation3], 1 }
 0x118   :  { %188 = vsyncpa [#allocation6], 1 }
 0x119   :  { %189 = vsyncpa [#allocation4], 1 }

</bundles_post_ra>
